<compile_context>
chip_gen: v5e
topology: v5e:2x2
jax: 0.10.0
libtpu: 0.0.40
codegen_flags: <defaults>
</compile_context>

<pallas_src>
import math

import jax
import jax.numpy as jnp
from jax.experimental import pallas as pl
from jax.experimental.pallas import tpu as pltpu

# ---- hyper-params (small, consistent with the module) -----------------------
B = 2            # batch
T = 8            # seq len (source == target, self-attention)
D = 32           # d_model
H = 4            # n_heads
DH = D // H      # head dim
SCALE = 1.0 / math.sqrt(DH)   # module requires an explicit nonzero scale
IS_CAUSAL = True
NEG_MIN = float(jnp.finfo(jnp.float32).min)


def mha_kernel(x_ref, wqkv_ref, bqkv_ref, bias_ref, wo_ref, bo_ref, o_ref):
    """Fused QKV projection + per-head 2-D attention + output projection.

    Everything lives fully in VMEM (no grid, no pipelining).
      x_ref    : (B*T, D)
      wqkv_ref : (D, 3D)    = [scale*Wq | Wk | Wv]   (pre-transposed: x @ W)
      bqkv_ref : (1, 3D)    = [scale*bq | 0  | bv]
      bias_ref : (B*T, B*T) additive mask: 0 where attention is allowed,
                 finfo.min elsewhere (causal within a batch, cross-batch blocked)
      wo_ref   : (D, D)
      bo_ref   : (1, D)
      o_ref    : (B*T, D)
    """
    xf = x_ref[...]                                                   # (B*T, D)
    wqkv = wqkv_ref[...]                                              # (D, 3D)
    wo = wo_ref[...]                                                  # (D, D)
    bias = bias_ref[...]                                              # (B*T, B*T)

    # --- fused QKV projection: one MXU push (scale already folded into Q) ---
    qkv = jnp.dot(xf, wqkv,
                  preferred_element_type=jnp.float32) + bqkv_ref[...]  # (B*T, 3D)

    # --- per-head 2-D attention, output projection accumulated per head:
    #       out = sum_h softmax(q_h k_h^T + bias) v_h @ Wo[h*DH:(h+1)*DH, :]
    acc = jnp.zeros((B * T, D), jnp.float32)
    for h in range(H):                     # static unroll, H = 4
        q_h = qkv[:, h * DH:(h + 1) * DH]                             # (B*T, DH)
        k_h = qkv[:, D + h * DH:D + (h + 1) * DH]                     # (B*T, DH)
        v_h = qkv[:, 2 * D + h * DH:2 * D + (h + 1) * DH]             # (B*T, DH)

        # q_h @ k_h^T without an explicit transpose (contract last dims).
        s = jax.lax.dot_general(q_h, k_h, (((1,), (1,)), ((), ())),
                                preferred_element_type=jnp.float32)   # (B*T, B*T)
        s = s + bias                                                   # additive mask

        # softmax over lanes (fp32)
        m = jnp.max(s, axis=-1, keepdims=True)
        e = jnp.exp(s - m)
        p = e * pl.reciprocal(jnp.sum(e, axis=-1, keepdims=True), approx=False)

        y_h = jnp.dot(p, v_h, preferred_element_type=jnp.float32)     # (B*T, DH)
        acc = acc + jnp.dot(y_h, wo[h * DH:(h + 1) * DH, :],
                            preferred_element_type=jnp.float32)       # (B*T, D)

    o_ref[...] = (acc + bo_ref[...]).astype(o_ref.dtype)


# ---- one-time parameter / constant preparation (outside the per-call path) --
def fuse_params(wq, bq, wk, wv, bv):
    """Fuse projection weights into [scale*Wq | Wk | Wv] once at setup."""
    wqkv = jnp.concatenate([wq * SCALE, wk, wv], axis=1)               # (D, 3D)
    bqkv = jnp.concatenate([bq * SCALE, jnp.zeros_like(bq), bv], axis=1)  # (1, 3D)
    return wqkv, bqkv


def build_attention_bias():
    """(B*T, B*T) additive bias: 0 where row may attend to col, finfo.min else."""
    rows = jnp.arange(B * T)
    batch_id = rows // T
    t_id = rows % T
    allowed = batch_id[:, None] == batch_id[None, :]                   # same batch
    if IS_CAUSAL:
        allowed = allowed & (t_id[None, :] <= t_id[:, None])           # causal
    return jnp.where(allowed, 0.0, NEG_MIN).astype(jnp.float32)


@jax.jit
def mha_pallas(x, wqkv, bqkv, bias, wo, bo):
    x2 = x.reshape(B * T, D)
    vmem = pl.BlockSpec(memory_space=pltpu.MemorySpace.VMEM)
    out = pl.pallas_call(
        mha_kernel,
        out_shape=jax.ShapeDtypeStruct((B * T, D), x.dtype),
        in_specs=[vmem, vmem, vmem, vmem, vmem, vmem],
        out_specs=vmem,
    )(x2, wqkv, bqkv, bias, wo, bo)
    return out.reshape(B, T, D)


# ---- pure-JAX reference (mirrors the PyTorch forward in eval mode) ----------
def mha_reference(x, wq, bq, wk, wv, bv, wo, bo):
    q = x @ wq + bq[0]
    k = x @ wk
    v = x @ wv + bv[0]
    split = lambda t: t.reshape(B, T, H, DH).transpose(0, 2, 1, 3)  # (B,H,T,DH)
    qh, kh, vh = split(q), split(k), split(v)
    s = jnp.einsum("bhqd,bhkd->bhqk", qh, kh) * SCALE
    if IS_CAUSAL:
        bias = jnp.triu(jnp.full((T, T), NEG_MIN), k=1)
        s = s + bias[None, None]
    p = jax.nn.softmax(s.astype(jnp.float32), axis=-1)
    y = jnp.einsum("bhqk,bhkd->bhqd", p, vh)
    y = y.transpose(0, 2, 1, 3).reshape(B, T, D)
    return y @ wo + bo[0]


if __name__ == "__main__":
    key = jax.random.PRNGKey(0)
    ks = jax.random.split(key, 9)

    # Deterministic synthetic parameters (shapes implied by nn.Linear(D, D)),
    # stored pre-transposed as (D_in, D_out) so kernels do `x @ W` directly.
    lim = 1.0 / math.sqrt(D)
    init_w = lambda k: jax.random.uniform(k, (D, D), jnp.float32, -lim, lim)
    init_b = lambda k: jax.random.uniform(k, (1, D), jnp.float32, -lim, lim)

    x = jax.random.normal(ks[0], (B, T, D), jnp.float32)
    wq = init_w(ks[1]); bq = init_b(ks[2])
    wk = init_w(ks[3])                       # k_bias=False
    wv = init_w(ks[4]); bv = init_b(ks[5])
    wo = init_w(ks[6]); bo = init_b(ks[7])

    # One-time setup: fuse weights / fold scale / build the mask constant.
    wqkv, bqkv = fuse_params(wq, bq, wk, wv, bv)
    attn_bias = build_attention_bias()

    out = mha_pallas(x, wqkv, bqkv, attn_bias, wo, bo)
    out = jax.block_until_ready(out)

    ref = mha_reference(x, wq, bq, wk, wv, bv, wo, bo)
    assert out.shape == (B, T, D)
    assert jnp.allclose(out, ref, atol=1e-4, rtol=1e-4), "mismatch vs JAX reference"

    # TODO(synk): dropout (attn_dropout / resid_dropout) is identity in eval mode
    # and is therefore not implemented; kv_cache / cross-attention (xc) /
    # attention_mask paths are omitted.
    print("KERNEL_OK")
</pallas_src>

<mosaic_0001>
module attributes {stable_mosaic.version = 11 : i64} {
  func.func @mha_kernel(%arg0: memref<16x32xf32, #tpu.memory_space<vmem>>, %arg1: memref<32x96xf32, #tpu.memory_space<vmem>>, %arg2: memref<1x96xf32, #tpu.memory_space<vmem>>, %arg3: memref<16x16xf32, #tpu.memory_space<vmem>>, %arg4: memref<32x32xf32, #tpu.memory_space<vmem>>, %arg5: memref<1x32xf32, #tpu.memory_space<vmem>>, %arg6: memref<16x32xf32, #tpu.memory_space<vmem>>) attributes {dimension_semantics = [], scalar_prefetch = 0 : i64, scratch_operands = 0 : i64, tpu.core_type = #tpu.core_type<tc>} {
    %c0 = arith.constant 0 : index
    %c0_0 = arith.constant 0 : index
    %0 = vector.load %arg0[%c0, %c0_0] : memref<16x32xf32, #tpu.memory_space<vmem>>, vector<16x32xf32>
    %c0_1 = arith.constant 0 : index
    %c0_2 = arith.constant 0 : index
    %1 = vector.load %arg1[%c0_1, %c0_2] : memref<32x96xf32, #tpu.memory_space<vmem>>, vector<32x96xf32>
    %c0_3 = arith.constant 0 : index
    %c0_4 = arith.constant 0 : index
    %2 = vector.load %arg4[%c0_3, %c0_4] : memref<32x32xf32, #tpu.memory_space<vmem>>, vector<32x32xf32>
    %c0_5 = arith.constant 0 : index
    %c0_6 = arith.constant 0 : index
    %3 = vector.load %arg3[%c0_5, %c0_6] : memref<16x16xf32, #tpu.memory_space<vmem>>, vector<16x16xf32>
    %cst = arith.constant dense<0.000000e+00> : vector<16x96xf32>
    %4 = tpu.matmul %0, %1, %cst {dimension_numbers = #tpu.dot_dimension_numbers<[1], [0], [0], [1], [0, 0, 1, 1], [], []>} : vector<16x32xf32>, vector<32x96xf32>, vector<16x96xf32> -> vector<16x96xf32>
    %c0_7 = arith.constant 0 : index
    %c0_8 = arith.constant 0 : index
    %5 = vector.load %arg2[%c0_7, %c0_8] : memref<1x96xf32, #tpu.memory_space<vmem>>, vector<1x96xf32>
    %6 = vector.broadcast %5 : vector<1x96xf32> to vector<16x96xf32>
    %7 = arith.addf %4, %6 : vector<16x96xf32>
    %cst_9 = arith.constant 0.000000e+00 : f32
    %8 = vector.broadcast %cst_9 : f32 to vector<16x32xf32>
    %9 = vector.extract_strided_slice %7 {offsets = [0, 0], sizes = [16, 8], strides = [1, 1]} : vector<16x96xf32> to vector<16x8xf32>
    %10 = vector.extract_strided_slice %7 {offsets = [0, 32], sizes = [16, 8], strides = [1, 1]} : vector<16x96xf32> to vector<16x8xf32>
    %11 = vector.extract_strided_slice %7 {offsets = [0, 64], sizes = [16, 8], strides = [1, 1]} : vector<16x96xf32> to vector<16x8xf32>
    %cst_10 = arith.constant dense<0.000000e+00> : vector<16x16xf32>
    %12 = tpu.matmul %9, %10, %cst_10 {dimension_numbers = #tpu.dot_dimension_numbers<[1], [1], [0], [0], [0, 0, 1, 0], [], []>} : vector<16x8xf32>, vector<16x8xf32>, vector<16x16xf32> -> vector<16x16xf32>
    %13 = arith.addf %12, %3 : vector<16x16xf32>
    %cst_11 = arith.constant dense<0xFF800000> : vector<16xf32>
    %14 = vector.multi_reduction <maximumf>, %13, %cst_11 [1] : vector<16x16xf32> to vector<16xf32>
    %15 = vector.shape_cast %14 : vector<16xf32> to vector<16x1xf32>
    %16 = vector.broadcast %15 : vector<16x1xf32> to vector<16x16xf32>
    %17 = arith.subf %13, %16 : vector<16x16xf32>
    %18 = math.exp %17 : vector<16x16xf32>
    %cst_12 = arith.constant dense<0.000000e+00> : vector<16xf32>
    %19 = vector.multi_reduction <add>, %18, %cst_12 [1] : vector<16x16xf32> to vector<16xf32>
    %20 = vector.shape_cast %19 : vector<16xf32> to vector<16x1xf32>
    %21 = tpu.reciprocal %20 : vector<16x1xf32> -> vector<16x1xf32>
    %22 = vector.broadcast %21 : vector<16x1xf32> to vector<16x16xf32>
    %23 = arith.mulf %18, %22 : vector<16x16xf32>
    %cst_13 = arith.constant dense<0.000000e+00> : vector<16x8xf32>
    %24 = tpu.matmul %23, %11, %cst_13 {dimension_numbers = #tpu.dot_dimension_numbers<[1], [0], [0], [1], [0, 0, 1, 1], [], []>} : vector<16x16xf32>, vector<16x8xf32>, vector<16x8xf32> -> vector<16x8xf32>
    %25 = vector.extract_strided_slice %2 {offsets = [0, 0], sizes = [8, 32], strides = [1, 1]} : vector<32x32xf32> to vector<8x32xf32>
    %cst_14 = arith.constant dense<0.000000e+00> : vector<16x32xf32>
    %26 = tpu.matmul %24, %25, %cst_14 {dimension_numbers = #tpu.dot_dimension_numbers<[1], [0], [0], [1], [0, 0, 1, 1], [], []>} : vector<16x8xf32>, vector<8x32xf32>, vector<16x32xf32> -> vector<16x32xf32>
    %27 = arith.addf %8, %26 : vector<16x32xf32>
    %28 = vector.extract_strided_slice %7 {offsets = [0, 8], sizes = [16, 8], strides = [1, 1]} : vector<16x96xf32> to vector<16x8xf32>
    %29 = vector.extract_strided_slice %7 {offsets = [0, 40], sizes = [16, 8], strides = [1, 1]} : vector<16x96xf32> to vector<16x8xf32>
    %30 = vector.extract_strided_slice %7 {offsets = [0, 72], sizes = [16, 8], strides = [1, 1]} : vector<16x96xf32> to vector<16x8xf32>
    %cst_15 = arith.constant dense<0.000000e+00> : vector<16x16xf32>
    %31 = tpu.matmul %28, %29, %cst_15 {dimension_numbers = #tpu.dot_dimension_numbers<[1], [1], [0], [0], [0, 0, 1, 0], [], []>} : vector<16x8xf32>, vector<16x8xf32>, vector<16x16xf32> -> vector<16x16xf32>
    %32 = arith.addf %31, %3 : vector<16x16xf32>
    %cst_16 = arith.constant dense<0xFF800000> : vector<16xf32>
    %33 = vector.multi_reduction <maximumf>, %32, %cst_16 [1] : vector<16x16xf32> to vector<16xf32>
    %34 = vector.shape_cast %33 : vector<16xf32> to vector<16x1xf32>
    %35 = vector.broadcast %34 : vector<16x1xf32> to vector<16x16xf32>
    %36 = arith.subf %32, %35 : vector<16x16xf32>
    %37 = math.exp %36 : vector<16x16xf32>
    %cst_17 = arith.constant dense<0.000000e+00> : vector<16xf32>
    %38 = vector.multi_reduction <add>, %37, %cst_17 [1] : vector<16x16xf32> to vector<16xf32>
    %39 = vector.shape_cast %38 : vector<16xf32> to vector<16x1xf32>
    %40 = tpu.reciprocal %39 : vector<16x1xf32> -> vector<16x1xf32>
    %41 = vector.broadcast %40 : vector<16x1xf32> to vector<16x16xf32>
    %42 = arith.mulf %37, %41 : vector<16x16xf32>
    %cst_18 = arith.constant dense<0.000000e+00> : vector<16x8xf32>
    %43 = tpu.matmul %42, %30, %cst_18 {dimension_numbers = #tpu.dot_dimension_numbers<[1], [0], [0], [1], [0, 0, 1, 1], [], []>} : vector<16x16xf32>, vector<16x8xf32>, vector<16x8xf32> -> vector<16x8xf32>
    %44 = vector.extract_strided_slice %2 {offsets = [8, 0], sizes = [8, 32], strides = [1, 1]} : vector<32x32xf32> to vector<8x32xf32>
    %cst_19 = arith.constant dense<0.000000e+00> : vector<16x32xf32>
    %45 = tpu.matmul %43, %44, %cst_19 {dimension_numbers = #tpu.dot_dimension_numbers<[1], [0], [0], [1], [0, 0, 1, 1], [], []>} : vector<16x8xf32>, vector<8x32xf32>, vector<16x32xf32> -> vector<16x32xf32>
    %46 = arith.addf %27, %45 : vector<16x32xf32>
    %47 = vector.extract_strided_slice %7 {offsets = [0, 16], sizes = [16, 8], strides = [1, 1]} : vector<16x96xf32> to vector<16x8xf32>
    %48 = vector.extract_strided_slice %7 {offsets = [0, 48], sizes = [16, 8], strides = [1, 1]} : vector<16x96xf32> to vector<16x8xf32>
    %49 = vector.extract_strided_slice %7 {offsets = [0, 80], sizes = [16, 8], strides = [1, 1]} : vector<16x96xf32> to vector<16x8xf32>
    %cst_20 = arith.constant dense<0.000000e+00> : vector<16x16xf32>
    %50 = tpu.matmul %47, %48, %cst_20 {dimension_numbers = #tpu.dot_dimension_numbers<[1], [1], [0], [0], [0, 0, 1, 0], [], []>} : vector<16x8xf32>, vector<16x8xf32>, vector<16x16xf32> -> vector<16x16xf32>
    %51 = arith.addf %50, %3 : vector<16x16xf32>
    %cst_21 = arith.constant dense<0xFF800000> : vector<16xf32>
    %52 = vector.multi_reduction <maximumf>, %51, %cst_21 [1] : vector<16x16xf32> to vector<16xf32>
    %53 = vector.shape_cast %52 : vector<16xf32> to vector<16x1xf32>
    %54 = vector.broadcast %53 : vector<16x1xf32> to vector<16x16xf32>
    %55 = arith.subf %51, %54 : vector<16x16xf32>
    %56 = math.exp %55 : vector<16x16xf32>
    %cst_22 = arith.constant dense<0.000000e+00> : vector<16xf32>
    %57 = vector.multi_reduction <add>, %56, %cst_22 [1] : vector<16x16xf32> to vector<16xf32>
    %58 = vector.shape_cast %57 : vector<16xf32> to vector<16x1xf32>
    %59 = tpu.reciprocal %58 : vector<16x1xf32> -> vector<16x1xf32>
    %60 = vector.broadcast %59 : vector<16x1xf32> to vector<16x16xf32>
    %61 = arith.mulf %56, %60 : vector<16x16xf32>
    %cst_23 = arith.constant dense<0.000000e+00> : vector<16x8xf32>
    %62 = tpu.matmul %61, %49, %cst_23 {dimension_numbers = #tpu.dot_dimension_numbers<[1], [0], [0], [1], [0, 0, 1, 1], [], []>} : vector<16x16xf32>, vector<16x8xf32>, vector<16x8xf32> -> vector<16x8xf32>
    %63 = vector.extract_strided_slice %2 {offsets = [16, 0], sizes = [8, 32], strides = [1, 1]} : vector<32x32xf32> to vector<8x32xf32>
    %cst_24 = arith.constant dense<0.000000e+00> : vector<16x32xf32>
    %64 = tpu.matmul %62, %63, %cst_24 {dimension_numbers = #tpu.dot_dimension_numbers<[1], [0], [0], [1], [0, 0, 1, 1], [], []>} : vector<16x8xf32>, vector<8x32xf32>, vector<16x32xf32> -> vector<16x32xf32>
    %65 = arith.addf %46, %64 : vector<16x32xf32>
    %66 = vector.extract_strided_slice %7 {offsets = [0, 24], sizes = [16, 8], strides = [1, 1]} : vector<16x96xf32> to vector<16x8xf32>
    %67 = vector.extract_strided_slice %7 {offsets = [0, 56], sizes = [16, 8], strides = [1, 1]} : vector<16x96xf32> to vector<16x8xf32>
    %68 = vector.extract_strided_slice %7 {offsets = [0, 88], sizes = [16, 8], strides = [1, 1]} : vector<16x96xf32> to vector<16x8xf32>
    %cst_25 = arith.constant dense<0.000000e+00> : vector<16x16xf32>
    %69 = tpu.matmul %66, %67, %cst_25 {dimension_numbers = #tpu.dot_dimension_numbers<[1], [1], [0], [0], [0, 0, 1, 0], [], []>} : vector<16x8xf32>, vector<16x8xf32>, vector<16x16xf32> -> vector<16x16xf32>
    %70 = arith.addf %69, %3 : vector<16x16xf32>
    %cst_26 = arith.constant dense<0xFF800000> : vector<16xf32>
    %71 = vector.multi_reduction <maximumf>, %70, %cst_26 [1] : vector<16x16xf32> to vector<16xf32>
    %72 = vector.shape_cast %71 : vector<16xf32> to vector<16x1xf32>
    %73 = vector.broadcast %72 : vector<16x1xf32> to vector<16x16xf32>
    %74 = arith.subf %70, %73 : vector<16x16xf32>
    %75 = math.exp %74 : vector<16x16xf32>
    %cst_27 = arith.constant dense<0.000000e+00> : vector<16xf32>
    %76 = vector.multi_reduction <add>, %75, %cst_27 [1] : vector<16x16xf32> to vector<16xf32>
    %77 = vector.shape_cast %76 : vector<16xf32> to vector<16x1xf32>
    %78 = tpu.reciprocal %77 : vector<16x1xf32> -> vector<16x1xf32>
    %79 = vector.broadcast %78 : vector<16x1xf32> to vector<16x16xf32>
    %80 = arith.mulf %75, %79 : vector<16x16xf32>
    %cst_28 = arith.constant dense<0.000000e+00> : vector<16x8xf32>
    %81 = tpu.matmul %80, %68, %cst_28 {dimension_numbers = #tpu.dot_dimension_numbers<[1], [0], [0], [1], [0, 0, 1, 1], [], []>} : vector<16x16xf32>, vector<16x8xf32>, vector<16x8xf32> -> vector<16x8xf32>
    %82 = vector.extract_strided_slice %2 {offsets = [24, 0], sizes = [8, 32], strides = [1, 1]} : vector<32x32xf32> to vector<8x32xf32>
    %cst_29 = arith.constant dense<0.000000e+00> : vector<16x32xf32>
    %83 = tpu.matmul %81, %82, %cst_29 {dimension_numbers = #tpu.dot_dimension_numbers<[1], [0], [0], [1], [0, 0, 1, 1], [], []>} : vector<16x8xf32>, vector<8x32xf32>, vector<16x32xf32> -> vector<16x32xf32>
    %84 = arith.addf %65, %83 : vector<16x32xf32>
    %c0_30 = arith.constant 0 : index
    %c0_31 = arith.constant 0 : index
    %85 = vector.load %arg5[%c0_30, %c0_31] : memref<1x32xf32, #tpu.memory_space<vmem>>, vector<1x32xf32>
    %86 = vector.broadcast %85 : vector<1x32xf32> to vector<16x32xf32>
    %87 = arith.addf %84, %86 : vector<16x32xf32>
    %c0_32 = arith.constant 0 : index
    %c0_33 = arith.constant 0 : index
    %88 = vector.load %arg6[%c0_32, %c0_33] : memref<16x32xf32, #tpu.memory_space<vmem>>, vector<16x32xf32>
    tpu.vector_store %arg6[%c0_32, %c0_33], %87 {strides = array<i32>} : memref<16x32xf32, #tpu.memory_space<vmem>>, vector<16x32xf32>,
    return
  }
}

</mosaic_0001>

<bundles_post_ra>
// kernel: mha_pallas.1
= control target key start
LH: loop header
LB: loop body
LE: loop exit
PB: predicated region body
PF: predicated region fallthrough
CT: control target
= control target key end

     0   :  { %11 = vsyncpa [#allocation3], 0  ;;  %s1226_s0 = inlined_call_operand.hbm [shape: f32[16,32], index: 0, kind: input, shape index: {}]   ;;  %s1227_s1 = inlined_call_operand.hbm [shape: f32[32,96], index: 1, kind: input, shape index: {}]   ;;  %s1228_s2 = inlined_call_operand.vmem [shape: f32[1,96], index: 2, kind: input, shape index: {}]   ;;  %s1229_s3 = inlined_call_operand.hbm [shape: f32[16,16], index: 3, kind: input, shape index: {}]   ;;  %s1230_s4 = inlined_call_operand.hbm [shape: f32[32,32], index: 4, kind: input, shape index: {}]   ;;  %s1231_s5 = inlined_call_operand.vmem [shape: f32[1,32], index: 5, kind: input, shape index: {}]   ;;  %s1232_s6 = inlined_call_operand.hbm [shape: f32[16,32], index: 6, kind: output, shape index: {}]  }
   0x1   :  { %12 = vsyncpa [#allocation6], 0 }
   0x2   :  { %13 = vsyncpa [#allocation9], 0 }
   0x3   :  { %14 = vsyncpa [#allocation4], 0  ;;  %s32_s23 = sshll.u32 %s1227_s1, 4  ;;  %s1006_s24 = smov [#allocation5]   ;;  %s33_s23 = int_to_ptr.hbm [resolvable:$true] %s32_s23 }
   0x4   :  { %s34_s25 = sshll.u32 %s1006_s24, 4  ;;  %s19_s28 = sshll.u32 %s1226_s0, 4  ;;  %s35_s25 = int_to_ptr.vmem [resolvable:$true] %s34_s25  ;;  %s20_s28 = int_to_ptr.hbm [resolvable:$true] %s19_s28 }
   0x5   :  { %s1007_s29 = smov 128   ;;  %s1008_s30 = smov 8  }
   0x6   :  { %40 = dma.hbm_to_vmem [thread:$0]  %s33_s23, 512, %s35_s25, [#allocation6], %s1007_s29, %s1007_s29, %s1008_s30  }
   0x7   :  { %s1009_s7 = smov [#allocation2]   ;;  %s47_s1 = sshll.u32 %s1229_s3, 4  ;;  %s48_s1 = int_to_ptr.hbm [resolvable:$true] %s47_s1 }
   0x8   :  { %s21_s8 = sshll.u32 %s1009_s7, 4  ;;  %s60_s12 = sshll.u32 %s1230_s4, 4  ;;  %s22_s8 = int_to_ptr.vmem [resolvable:$true] %s21_s8  ;;  %s61_s12 = int_to_ptr.hbm [resolvable:$true] %s60_s12 }
   0x9   :  { %27 = dma.hbm_to_vmem [thread:$0]  %s20_s28, 256, %s22_s8, [#allocation3], %s1007_s29, %s1007_s29, %s1008_s30  }
   0xa   :  { %s1010_s13 = smov [#allocation7]   ;;  %s1011_s15 = smov [#allocation8]  }
   0xb   :  { %s49_s14 = sshll.u32 %s1010_s13, 4  ;;  %s62_s3 = sshll.u32 %s1011_s15, 4  ;;  %s50_s14 = int_to_ptr.vmem [resolvable:$true] %s49_s14  ;;  %s63_s3 = int_to_ptr.vmem [resolvable:$true] %s62_s3 }
   0xc   :  { %55 = dma.hbm_to_vmem [thread:$0]  %s48_s1, 256, %s50_s14, [#allocation6], %s1007_s29, %s1007_s29, %s1008_s30  }
   0xd   :  { %68 = dma.hbm_to_vmem [thread:$0]  %s61_s12, 512, %s63_s3, [#allocation9], %s1007_s29, %s1007_s29, %s1008_s30  }
   0xe   :  { %998 = dma.done.wait [#allocation3], 256  }
   0xf   :  { %999 = vsyncadd [#allocation3], 4294967040 }
  0x10   :  { %1000 = dma.done.wait [#allocation6], 768  }
  0x11   :  { %1001 = vsyncadd [#allocation6], 4294966528 }
  0x12   :  { %1002 = dma.done.wait [#allocation9], 512  }
  0x13   :  { %1003 = vsyncadd [#allocation9], 4294966784  ;;  %v92_v0 = vld [vmem:[#allocation5 + $0x18] sm:$0xff]  ;;  %v91_v1 = vld [vmem:[#allocation5 + $0x10] sm:$0xff]  ;;  %vm103_vm0 = vcmask 261120   ;;  %s1012_s17 = smov 96  }
  0x14   :  { %122 = vmatpush.msra.mxu0 %v92_v0  ;;  %v90_v2 = vld [vmem:[#allocation5 + $0x8] sm:$0xff]  ;;  %v89_v3 = vld [vmem:[#allocation5] sm:$0xff]  ;;  %v87_v4 = vld [vmem:[#allocation2] sm:$0xff]  ;;  %s1013_s18 = smov 64   ;;  %s1014_s19 = smov 120   ;;  %vm139_vm1 = vcmask 64512  }
  0x15   :  { %v88_v5 = vld [vmem:[#allocation2 + $0x8] sm:$0xff]  ;;  %v844_v7 = vld [vmem:[%s1228_s2] ss:$0 sm:$0xff]  ;;  %s1015_s20 = smov 80   ;;  %s1016_s2 = smov 72   ;;  %v1106_v17 = vld [vmem:[#allocation7] sm:$0xff] }
  0x16   :  { %123 = vmatpush.msra.mxu0 %v91_v1  ;;  %s1017_s21 = smov 112   ;;  %vm171_vm2 = vcmask 130048   ;;  %v1110_v21 = vld [vmem:[#allocation7 + $0x8] sm:$0xff]  ;;  %s1018_s22 = smov 88   ;;  %v93_v36 = vld [vmem:[#allocation8] sm:$0xff] }
  0x17   :  { %s1019_s23 = smov 104   ;;  %s1020_s24 = smov 48  }
  0x18   :  { %124 = vmatpush.msra.mxu0 %v90_v2  ;;  %s1021_s25 = smov 56   ;;  %s1022_s26 = smov 40  }
  0x19   :  { %s1023_s7 = smov [#allocation10]   ;;  %s755_s1 = sshll.u32 %s1232_s6, 4  ;;  %s756_s1 = int_to_ptr.hbm [resolvable:$true] %s755_s1 }
  0x1a   :  { %125 = vmatpush.msra.mxu0 %v89_v3  ;;  %s753_s8 = sshll.u32 %s1023_s7, 4  ;;  %s754_s8 = int_to_ptr.vmem [resolvable:$true] %s753_s8 }
  0x1b   :  { %770 = vmatmul.msk.f32.vlgmr.msra.gmra.mxu0 %vm103_vm0, %v87_v4 }
  0x23   :  { %771 = vmatmul.msk.f32.gmra.mxu0 %vm103_vm0, %v88_v5 }
  0x98   :  { %v127_v6 = vpop.f32.mrf.mxu0 }
  0x99   :  { %v128_v10 = vadd.f32 %v844_v7, %v127_v6 }
  0xa0   :  { %v130_v8 = vpop.f32.mrf.mxu0 }
  0xa1   :  { %v1088_v9 = vadd.f32 %v844_v7, %v130_v8 }
  0xa3   :  { %137 = vrot.lane.b32.xlu0 %v1088_v9, %s1012_s17  ;;  %v1092_v11 = vpack.i.bf16 %v128_v10, %v1088_v9 }
  0xab   :  { %135 = vrot.lane.b32.xlu0 %v128_v10, %s1012_s17 }
  0xb3   :  { %825 = vrot.lane.b32.xlu0 %v1092_v11, %s1013_s18 }
  0xbb   :  { %255 = vrot.lane.b32.xlu0 %v128_v10, %s1014_s19 }
  0xc3   :  { %257 = vrot.lane.b32.xlu0 %v1088_v9, %s1014_s19 }
  0xcb   :  { %441 = vrot.lane.b32.xlu0 %v1088_v9, %s1015_s20 }
  0xd3   :  { %592 = vrot.lane.b32.xlu0 %v128_v10, %s1016_s2 }
  0xdb   :  { %437 = vrot.lane.b32.xlu0 %v1088_v9, %s1017_s21 }
 0x115   :  { %v138_v12 = vpop.permute.xlu0 %137 }
 0x116   :  { %772 = vmatpush.xpose.msk.msra.mxu1 %vm139_vm1, %v138_v12 }
 0x11d   :  { %v136_v13 = vpop.permute.xlu0 %135 }
 0x11e   :  { %773 = vmatpush.xpose.msk.msra.mxu1 %vm139_vm1, %v136_v13 }
 0x121   :  { %774 = vmatmul.msk.f32.vlgmr.msra.gmra.mxu1 %vm139_vm1, %v128_v10 }
 0x122   :  { %427 = vmatpush.msrb.mxu1 %v93_v36 }
 0x125   :  { %v826_v14 = vpop.permute.xlu0 %825 }
 0x126   :  { %v827_v15 = vunpack.i.l.bf16 %v826_v14  ;;  %v828_v16 = vunpack.i.h.bf16 %v826_v14 }
 0x128   :  { %246 = vmatpush.msrb.mxu0 %v827_v15  ;;  %804 = vmatpush.msra.mxu2 %v827_v15 }
 0x129   :  { %775 = vmatmul.msk.f32.gmra.mxu1 %vm139_vm1, %v1088_v9 }
 0x12a   :  { %247 = vmatpush.msrb.mxu0 %v828_v16  ;;  %805 = vmatpush.msra.mxu2 %v828_v16 }
 0x12d   :  { %v256_v37 = vpop.permute.xlu0 %255 }
 0x135   :  { %v258_v40 = vpop.permute.xlu0 %257 }
 0x13d   :  { %v442_v53 = vpop.permute.xlu0 %441 }
 0x145   :  { %v593_v3 = vpop.permute.xlu0 %592 }
 0x14d   :  { %v438_v5 = vpop.permute.xlu0 %437 }
 0x19e   :  { %v165_v18 = vpop.f32.mrf.mxu1 }
 0x19f   :  { %v166_v19 = vadd.f32 %v165_v18, %v1106_v17 }
 0x1a1   :  { %v172_v20 = vsel %vm171_vm2, %v166_v19, -inf }
 0x1a2   :  { %173 = vmax.xlane.f32.xlu1 %v172_v20 }
 0x1a6   :  { %v168_v22 = vpop.f32.mrf.mxu1 }
 0x1a7   :  { %v169_v23 = vadd.f32 %v168_v22, %v1110_v21 }
 0x1a9   :  { %v175_v24 = vsel %vm171_vm2, %v169_v23, -inf }
 0x1aa   :  { %176 = vmax.xlane.f32.xlu1 %v175_v24 }
 0x1c3   :  { %261 = vrot.lane.b32.xlu1 %v1088_v9, %s1018_s22 }
 0x1cb   :  { %439 = vrot.lane.b32.xlu1 %v128_v10, %s1015_s20 }
 0x1d3   :  { %588 = vrot.lane.b32.xlu1 %v128_v10, %s1019_s23 }
 0x215   :  { %v174_v25 = vpop.xlane.xlu1 %173 }
 0x216   :  { %v178_v26 = vsub.f32 %v166_v19, %v174_v25 }
 0x218   :  { %v180_v27 = vmul.f32 1.442695, %v178_v26 }
 0x21a   :  { %846 = vpow2.f32 %v180_v27 }
 0x21d   :  { %v177_v28 = vpop.xlane.xlu1 %176 }
 0x21e   :  { %v179_v29 = vsub.f32 %v169_v23, %v177_v28 }
 0x220   :  { %v847_v30 = vpop.eup %846  ;;  %v182_v31 = vmul.f32 1.442695, %v179_v29 }
 0x221   :  { %v184_v32 = vsel %vm171_vm2, %v847_v30, 0.0 }
 0x222   :  { %848 = vpow2.f32 %v182_v31  ;;  %185 = vadd.xlane.f32.xlu2 %v184_v32 }
 0x228   :  { %v849_v33 = vpop.eup %848 }
 0x229   :  { %v187_v34 = vsel %vm171_vm2, %v849_v33, 0.0 }
 0x22a   :  { %188 = vadd.xlane.f32.xlu2 %v187_v34 }
 0x235   :  { %v262_v35 = vpop.permute.xlu1 %261 }
 0x236   :  { %778 = vmatpush.xpose.msk.msra.mxu3 %vm139_vm1, %v262_v35 }
 0x23d   :  { %v440_v60 = vpop.permute.xlu1 %439 }
 0x242   :  { %259 = vrot.lane.b32.xlu2 %v128_v10, %s1018_s22 }
 0x245   :  { %v589_v15 = vpop.permute.xlu1 %588 }
 0x24a   :  { %594 = vrot.lane.b32.xlu2 %v1088_v9, %s1016_s2 }
 0x252   :  { %435 = vrot.lane.b32.xlu2 %v128_v10, %s1017_s21 }
 0x25a   :  { %590 = vrot.lane.b32.xlu2 %v1088_v9, %s1019_s23 }
 0x295   :  { %v186_v38 = vpop.xlane.xlu2 %185 }
 0x296   :  { %850 = vrcp.f32 %v186_v38  ;;  %v201_v44 = vand.u32 2147483648, %v186_v38  ;;  %v199_v46 = vand.u32 2147483647, %v186_v38  ;;  %vm195_vm4 = vweird.f32 %v186_v38 }
 0x298   :  { %v202_v49 = vor.u32 1.1754944e-38, %v201_v44  ;;  %vm200_vm6 = vcmp.eq.f32.partialorder %v199_v46, 8.507059e+37 }
 0x29c   :  { %v851_v39 = vpop.eup %850 }
 0x29d   :  { %v191_v41 = vmul.f32 %v851_v39, %v186_v38  ;;  %v189_v42 = vpop.xlane.xlu2 %188  ;;  %vm196_vm3 = vweird.f32 %v851_v39 }
 0x29e   :  { %852 = vrcp.f32 %v189_v42  ;;  %vm197_vm5 = vmor %vm195_vm4, %vm196_vm3  ;;  %v215_v57 = vand.u32 2147483648, %v189_v42  ;;  %v213_v59 = vand.u32 2147483647, %v189_v42  ;;  %vm209_vm8 = vweird.f32 %v189_v42 }
 0x29f   :  { %v192_v43 = vsub.f32 1.0, %v191_v41 }
 0x2a0   :  { %v216_v62 = vor.u32 1.1754944e-38, %v215_v57  ;;  %vm214_vm10 = vcmp.eq.f32.partialorder %v213_v59, 8.507059e+37 }
 0x2a1   :  { %v193_v45 = vmul.f32 %v851_v39, %v192_v43 }
 0x2a3   :  { %v194_v47 = vadd.f32 %v851_v39, %v193_v45 }
 0x2a4   :  { %v853_v48 = vpop.eup %852 }
 0x2a5   :  { %v205_v50 = vmul.f32 %v853_v48, %v189_v42  ;;  %v260_v51 = vpop.permute.xlu2 %259  ;;  %v198_v52 = vsel %vm197_vm5, %v851_v39, %v194_v47  ;;  %vm210_vm7 = vweird.f32 %v853_v48 }
 0x2a6   :  { %779 = vmatpush.xpose.msk.msra.mxu3 %vm139_vm1, %v260_v51  ;;  %v203_v54 = vsel %vm200_vm6, %v202_v49, %v198_v52  ;;  %vm211_vm9 = vmor %vm209_vm8, %vm210_vm7 }
 0x2a7   :  { %v206_v55 = vsub.f32 1.0, %v205_v50  ;;  %v218_v56 = vmul.f32 %v847_v30, %v203_v54 }
 0x2a9   :  { %v207_v58 = vmul.f32 %v853_v48, %v206_v55  ;;  %776 = vmatmul.msk.f32.vlgmr.msrb.gmra.mxu0 %vm171_vm2, %v218_v56  ;;  %780 = vmatmul.msk.f32.vlgmr.msra.gmra.mxu3 %vm139_vm1, %v256_v37 }
 0x2aa   :  { %788 = vmatpush.xpose.msk.msrb.mxu3 %vm139_vm1, %v442_v53 }
 0x2ab   :  { %v208_v61 = vadd.f32 %v853_v48, %v207_v58 }
 0x2ad   :  { %v595_v63 = vpop.permute.xlu2 %594  ;;  %v212_v0 = vsel %vm211_vm9, %v853_v48, %v208_v61 }
 0x2ae   :  { %789 = vmatpush.xpose.msk.msrb.mxu3 %vm139_vm1, %v440_v60  ;;  %796 = vmatpush.xpose.msk.msra.mxu1 %vm139_vm1, %v595_v63  ;;  %v217_v1 = vsel %vm214_vm10, %v216_v62, %v212_v0 }
 0x2af   :  { %v219_v2 = vmul.f32 %v849_v33, %v217_v1 }
 0x2b1   :  { %777 = vmatmul.msk.f32.vlgmr.msra.gmra.mxu2 %vm171_vm2, %v219_v2  ;;  %781 = vmatmul.msk.f32.gmra.mxu3 %vm139_vm1, %v258_v40 }
 0x2b2   :  { %797 = vmatpush.xpose.msk.msra.mxu1 %vm139_vm1, %v593_v3 }
 0x2b5   :  { %v436_v4 = vpop.permute.xlu2 %435 }
 0x2b9   :  { %790 = vmatmul.msk.f32.vlgmr.msrb.gmra.mxu3 %vm139_vm1, %v436_v4 }
 0x2bd   :  { %v591_v20 = vpop.permute.xlu2 %590 }
 0x2c1   :  { %791 = vmatmul.msk.f32.gmra.mxu3 %vm139_vm1, %v438_v5 }
 0x326   :  { %v249_v6 = vpop.f32.mrf.mxu0 }
 0x327   :  { %786 = vmatmul.msk.f32.vlgmr.msrb.gmra.mxu1 %vm139_vm1, %v249_v6 }
 0x32c   :  { %v288_v7 = vpop.f32.mrf.mxu3 }
 0x32d   :  { %v289_v8 = vadd.f32 %v288_v7, %v1106_v17 }
 0x32f   :  { %v294_v9 = vsel %vm171_vm2, %v289_v8, -inf }
 0x330   :  { %295 = vmax.xlane.f32.xlu1 %v294_v9 }
 0x334   :  { %v252_v10 = vpop.f32.mrf.mxu2  ;;  %v291_v12 = vpop.f32.mrf.mxu3 }
 0x335   :  { %v292_v13 = vadd.f32 %v291_v12, %v1110_v21  ;;  %787 = vmatmul.msk.f32.gmra.mxu1 %vm139_vm1, %v252_v10 }
 0x337   :  { %v297_v14 = vsel %vm171_vm2, %v292_v13, -inf }
 0x338   :  { %298 = vmax.xlane.f32.xlu0 %v297_v14 }
 0x33c   :  { %v468_v16 = vpop.f32.mrf.mxu3 }
 0x33d   :  { %v469_v18 = vadd.f32 %v468_v16, %v1106_v17  ;;  %798 = vmatmul.msk.f32.vlgmr.msra.gmra.mxu1 %vm139_vm1, %v589_v15 }
 0x33f   :  { %v474_v19 = vsel %vm171_vm2, %v469_v18, -inf }
 0x340   :  { %475 = vmax.xlane.f32.xlu1 %v474_v19 }
 0x344   :  { %v471_v22 = vpop.f32.mrf.mxu3 }
 0x345   :  { %v472_v23 = vadd.f32 %v471_v22, %v1110_v21  ;;  %799 = vmatmul.msk.f32.gmra.mxu1 %vm139_vm1, %v591_v20 }
 0x347   :  { %v477_v24 = vsel %vm171_vm2, %v472_v23, -inf }
 0x348   :  { %478 = vmax.xlane.f32.xlu0 %v477_v24 }
 0x3a3   :  { %v296_v25 = vpop.xlane.xlu1 %295 }
 0x3a4   :  { %v300_v26 = vsub.f32 %v289_v8, %v296_v25  ;;  %v1146_v28 = vpop.f32.mrf.mxu1 }
 0x3a6   :  { %v302_v27 = vmul.f32 1.442695, %v300_v26 }
 0x3a8   :  { %854 = vpow2.f32 %v302_v27 }
 0x3ab   :  { %v299_v32 = vpop.xlane.xlu0 %298 }
 0x3ac   :  { %v301_v39 = vsub.f32 %v292_v13, %v299_v32 }
 0x3ae   :  { %v1148_v29 = vpop.eup %854  ;;  %v304_v45 = vmul.f32 1.442695, %v301_v39 }
 0x3af   :  { %v306_v30 = vsel %vm171_vm2, %v1148_v29, 0.0 }
 0x3b0   :  { %307 = vadd.xlane.f32.xlu1 %v306_v30 }
 0x3b2   :  { %v1152_v31 = vpop.f32.mrf.mxu1 }
 0x3b3   :  { %v476_v33 = vpop.xlane.xlu1 %475 }
 0x3b4   :  { %v480_v34 = vsub.f32 %v469_v18, %v476_v33 }
 0x3b6   :  { %v482_v35 = vmul.f32 1.442695, %v480_v34 }
 0x3b8   :  { %856 = vpow2.f32 %v482_v35 }
 0x3ba   :  { %v621_v36 = vpop.f32.mrf.mxu1 }
 0x3bb   :  { %v622_v37 = vadd.f32 %v621_v36, %v1106_v17  ;;  %v479_v38 = vpop.xlane.xlu0 %478 }
 0x3bc   :  { %v481_v40 = vsub.f32 %v472_v23, %v479_v38 }
 0x3bd   :  { %v627_v41 = vsel %vm171_vm2, %v622_v37, -inf }
 0x3be   :  { %v1156_v42 = vpop.eup %856  ;;  %v484_v43 = vmul.f32 1.442695, %v481_v40  ;;  %628 = vmax.xlane.f32.xlu2 %v627_v41 }
 0x3bf   :  { %v486_v44 = vsel %vm171_vm2, %v1156_v42, 0.0 }
 0x3c0   :  { %858 = vpow2.f32 %v484_v43  ;;  %487 = vadd.xlane.f32.xlu1 %v486_v44 }
 0x3c1   :  { %860 = vpow2.f32 %v304_v45 }
 0x3c2   :  { %v624_v46 = vpop.f32.mrf.mxu1 }
 0x3c3   :  { %v625_v47 = vadd.f32 %v624_v46, %v1110_v21 }
 0x3c5   :  { %v630_v17 = vsel %vm171_vm2, %v625_v47, -inf }
 0x3c6   :  { %v1162_v48 = vpop.eup %858  ;;  %631 = vmax.xlane.f32.xlu2 %v630_v17 }
 0x3c7   :  { %v489_v49 = vsel %vm171_vm2, %v1162_v48, 0.0  ;;  %v1166_v50 = vpop.eup %860 }
 0x3c8   :  { %490 = vadd.xlane.f32.xlu1 %v489_v49  ;;  %v309_v51 = vsel %vm171_vm2, %v1166_v50, 0.0 }
 0x3ce   :  { %310 = vadd.xlane.f32.xlu2 %v309_v51 }
 0x3e1   :  { %840 = vrot.lane.b32.xlu1 %v1092_v11, %s1020_s24 }
 0x3e6   :  { %830 = vrot.lane.b32.xlu2 %v1092_v11, %s1021_s25 }
 0x423   :  { %v308_v21 = vpop.xlane.xlu1 %307 }
 0x424   :  { %862 = vrcp.f32 %v308_v21  ;;  %v323_v6 = vand.u32 2147483648, %v308_v21  ;;  %vm317_vm12 = vweird.f32 %v308_v21  ;;  %v321_v7 = vand.u32 2147483647, %v308_v21 }
 0x426   :  { %v324_v13 = vor.u32 1.1754944e-38, %v323_v6  ;;  %vm322_vm14 = vcmp.eq.f32.partialorder %v321_v7, 8.507059e+37 }
 0x42a   :  { %v863_v54 = vpop.eup %862 }
 0x42b   :  { %v313_v56 = vmul.f32 %v863_v54, %v308_v21  ;;  %vm318_vm11 = vweird.f32 %v863_v54 }
 0x42c   :  { %vm319_vm13 = vmor %vm317_vm12, %vm318_vm11 }
 0x42d   :  { %v314_v60 = vsub.f32 1.0, %v313_v56  ;;  %v94_v56 = vld [vmem:[#allocation8 + $0x8] sm:$0xff] }
 0x42e   :  { %398 = vmatpush.msra.mxu0 %v94_v56 }
 0x42f   :  { %v315_v0 = vmul.f32 %v863_v54, %v314_v60 }
 0x431   :  { %v629_v52 = vpop.xlane.xlu2 %628  ;;  %v316_v3 = vadd.f32 %v863_v54, %v315_v0  ;;  %v95_v0 = vld [vmem:[#allocation8 + $0x10] sm:$0xff] }
 0x432   :  { %v633_v53 = vsub.f32 %v622_v37, %v629_v52  ;;  %578 = vmatpush.msrb.mxu0 %v95_v0 }
 0x433   :  { %v1172_v57 = vpop.xlane.xlu1 %487  ;;  %v320_v10 = vsel %vm319_vm13, %v863_v54, %v316_v3 }
 0x434   :  { %v635_v55 = vmul.f32 1.442695, %v633_v53  ;;  %v325_v18 = vsel %vm322_vm14, %v324_v13, %v320_v10  ;;  %vm497_vm7 = vweird.f32 %v1172_v57  ;;  %v501_v41 = vand.u32 2147483647, %v1172_v57 }
 0x435   :  { %v340_v26 = vmul.f32 %v1148_v29, %v325_v18  ;;  %v503_v29 = vand.u32 2147483648, %v1172_v57 }
 0x436   :  { %864 = vpow2.f32 %v635_v55  ;;  %vm502_vm9 = vcmp.eq.f32.partialorder %v501_v41, 8.507059e+37 }
 0x437   :  { %866 = vrcp.f32 %v1172_v57 }
 0x439   :  { %v632_v58 = vpop.xlane.xlu2 %631 }
 0x43a   :  { %v634_v59 = vsub.f32 %v625_v47, %v632_v58  ;;  %v504_v47 = vor.u32 1.1754944e-38, %v503_v29 }
 0x43b   :  { %v1179_v4 = vpop.xlane.xlu1 %490 }
 0x43c   :  { %v1174_v61 = vpop.eup %864  ;;  %v637_v62 = vmul.f32 1.442695, %v634_v59  ;;  %v517_v51 = vand.u32 2147483648, %v1179_v4  ;;  %vm511_vm11 = vweird.f32 %v1179_v4  ;;  %v515_v21 = vand.u32 2147483647, %v1179_v4 }
 0x43d   :  { %v639_v63 = vsel %vm171_vm2, %v1174_v61, 0.0  ;;  %v867_v2 = vpop.eup %866 }
 0x43e   :  { %868 = vpow2.f32 %v637_v62  ;;  %640 = vadd.xlane.f32.xlu0 %v639_v63  ;;  %v493_v9 = vmul.f32 %v867_v2, %v1172_v57  ;;  %vm498_vm6 = vweird.f32 %v867_v2  ;;  %v518_v53 = vor.u32 1.1754944e-38, %v517_v51 }
 0x43f   :  { %vm499_vm8 = vmor %vm497_vm7, %vm498_vm6  ;;  %vm516_vm13 = vcmp.eq.f32.partialorder %v515_v21, 8.507059e+37 }
 0x440   :  { %v494_v19 = vsub.f32 1.0, %v493_v9 }
 0x441   :  { %v311_v1 = vpop.xlane.xlu2 %310 }
 0x442   :  { %870 = vrcp.f32 %v311_v1  ;;  %v337_v23 = vand.u32 2147483648, %v311_v1  ;;  %v335_v27 = vand.u32 2147483647, %v311_v1  ;;  %v495_v30 = vmul.f32 %v867_v2, %v494_v19 }
 0x443   :  { %872 = vrcp.f32 %v1179_v4  ;;  %vm331_vm3 = vweird.f32 %v311_v1 }
 0x444   :  { %v1181_v5 = vpop.eup %868  ;;  %v338_v34 = vor.u32 1.1754944e-38, %v337_v23  ;;  %vm336_vm5 = vcmp.eq.f32.partialorder %v335_v27, 8.507059e+37  ;;  %v496_v37 = vadd.f32 %v867_v2, %v495_v30 }
 0x445   :  { %v642_v8 = vsel %vm171_vm2, %v1181_v5, 0.0 }
 0x446   :  { %643 = vadd.xlane.f32.xlu0 %v642_v8  ;;  %v500_v45 = vsel %vm499_vm8, %v867_v2, %v496_v37 }
 0x447   :  { %v505_v17 = vsel %vm502_vm9, %v504_v47, %v500_v45 }
 0x448   :  { %v871_v12 = vpop.eup %870 }
 0x449   :  { %v327_v14 = vmul.f32 %v871_v12, %v311_v1  ;;  %v831_v15 = vpop.permute.xlu2 %830  ;;  %v873_v22 = vpop.eup %872  ;;  %vm332_vm15 = vweird.f32 %v871_v12 }
 0x44a   :  { %v832_v16 = vunpack.i.l.bf16 %v831_v15  ;;  %v833_v24 = vunpack.i.h.bf16 %v831_v15  ;;  %v507_v32 = vmul.f32 %v873_v22, %v1179_v4  ;;  %vm333_vm4 = vmor %vm331_vm3, %vm332_vm15  ;;  %vm512_vm10 = vweird.f32 %v873_v22 }
 0x44b   :  { %v328_v20 = vsub.f32 1.0, %v327_v14  ;;  %vm513_vm12 = vmor %vm511_vm11, %vm512_vm10 }
 0x44c   :  { %368 = vmatpush.msrb.mxu2 %v832_v16  ;;  %v508_v38 = vsub.f32 1.0, %v507_v32 }
 0x44d   :  { %v329_v25 = vmul.f32 %v871_v12, %v328_v20 }
 0x44e   :  { %369 = vmatpush.msrb.mxu2 %v833_v24  ;;  %v509_v46 = vmul.f32 %v873_v22, %v508_v38 }
 0x44f   :  { %782 = vmatmul.msk.f32.vlgmr.msrb.gmra.mxu2 %vm171_vm2, %v340_v26  ;;  %v330_v33 = vadd.f32 %v871_v12, %v329_v25  ;;  %v96_v26 = vld [vmem:[#allocation8 + $0x18] sm:$0xff] }
 0x450   :  { %v510_v49 = vadd.f32 %v873_v22, %v509_v46 }
 0x451   :  { %v334_v35 = vsel %vm333_vm4, %v871_v12, %v330_v33 }
 0x452   :  { %v339_v36 = vsel %vm336_vm5, %v338_v34, %v334_v35  ;;  %v514_v52 = vsel %vm513_vm12, %v873_v22, %v510_v49 }
 0x453   :  { %v841_v39 = vpop.permute.xlu1 %840  ;;  %v341_v43 = vmul.f32 %v1166_v50, %v339_v36  ;;  %v520_v50 = vmul.f32 %v1156_v42, %v505_v17  ;;  %v519_v54 = vsel %vm516_vm13, %v518_v53, %v514_v52  ;;  %v845_v36 = vld [vmem:[%s1231_s5] ss:$0 sm:$0xff] }
 0x454   :  { %v842_v40 = vunpack.i.l.bf16 %v841_v39  ;;  %v843_v44 = vunpack.i.h.bf16 %v841_v39  ;;  %v521_v55 = vmul.f32 %v1162_v48, %v519_v54 }
 0x456   :  { %548 = vmatpush.msra.mxu2 %v842_v40 }
 0x457   :  { %783 = vmatmul.msk.f32.gmra.mxu2 %vm171_vm2, %v341_v43 }
 0x458   :  { %549 = vmatpush.msra.mxu2 %v843_v44 }
 0x45a   :  { %835 = vrot.lane.b32.xlu0 %v1092_v11, %s1022_s26  ;;  %731 = vmatpush.msrb.mxu2 %v96_v26 }
 0x45f   :  { %792 = vmatmul.msk.f32.vlgmr.msra.gmra.mxu2 %vm171_vm2, %v520_v50 }
 0x467   :  { %793 = vmatmul.msk.f32.gmra.mxu2 %vm171_vm2, %v521_v55 }
 0x4b1   :  { %v641_v11 = vpop.xlane.xlu0 %640 }
 0x4b2   :  { %874 = vrcp.f32 %v641_v11  ;;  %v656_v48 = vand.u32 2147483648, %v641_v11  ;;  %vm650_vm15 = vweird.f32 %v641_v11  ;;  %v654_v3 = vand.u32 2147483647, %v641_v11 }
 0x4b4   :  { %v657_v7 = vor.u32 1.1754944e-38, %v656_v48  ;;  %vm655_vm4 = vcmp.eq.f32.partialorder %v654_v3, 8.507059e+37 }
 0x4b8   :  { %v875_v57 = vpop.eup %874 }
 0x4b9   :  { %v644_v58 = vpop.xlane.xlu0 %643  ;;  %v646_v42 = vmul.f32 %v875_v57, %v641_v11  ;;  %vm651_vm14 = vweird.f32 %v875_v57 }
 0x4ba   :  { %876 = vrcp.f32 %v644_v58  ;;  %vm652_vm3 = vmor %vm650_vm15, %vm651_vm14  ;;  %v670_v13 = vand.u32 2147483648, %v644_v58  ;;  %vm664_vm6 = vweird.f32 %v644_v58  ;;  %v668_v16 = vand.u32 2147483647, %v644_v58 }
 0x4bb   :  { %v647_v59 = vsub.f32 1.0, %v646_v42 }
 0x4bc   :  { %v671_v20 = vor.u32 1.1754944e-38, %v670_v13  ;;  %vm669_vm8 = vcmp.eq.f32.partialorder %v668_v16, 8.507059e+37 }
 0x4bd   :  { %v648_v62 = vmul.f32 %v875_v57, %v647_v59 }
 0x4bf   :  { %v649_v1 = vadd.f32 %v875_v57, %v648_v62 }
 0x4c0   :  { %v877_v60 = vpop.eup %876 }
 0x4c1   :  { %v660_v63 = vmul.f32 %v877_v60, %v644_v58  ;;  %v653_v4 = vsel %vm652_vm3, %v875_v57, %v649_v1  ;;  %vm665_vm5 = vweird.f32 %v877_v60 }
 0x4c2   :  { %v658_v9 = vsel %vm655_vm4, %v657_v7, %v653_v4  ;;  %vm666_vm7 = vmor %vm664_vm6, %vm665_vm5 }
 0x4c3   :  { %v661_v2 = vsub.f32 1.0, %v660_v63  ;;  %v673_v15 = vmul.f32 %v1174_v61, %v658_v9 }
 0x4c5   :  { %v662_v6 = vmul.f32 %v877_v60, %v661_v2 }
 0x4c7   :  { %v663_v12 = vadd.f32 %v877_v60, %v662_v6 }
 0x4c9   :  { %v667_v19 = vsel %vm666_vm7, %v877_v60, %v663_v12 }
 0x4ca   :  { %v672_v22 = vsel %vm669_vm8, %v671_v20, %v667_v19 }
 0x4cb   :  { %v674_v23 = vmul.f32 %v1181_v5, %v672_v22 }
 0x4cc   :  { %v836_v8 = vpop.permute.xlu0 %835 }
 0x4cd   :  { %v837_v10 = vunpack.i.l.bf16 %v836_v8  ;;  %v838_v14 = vunpack.i.h.bf16 %v836_v8 }
 0x4cf   :  { %701 = vmatpush.msra.mxu3 %v837_v10 }
 0x4d1   :  { %702 = vmatpush.msra.mxu3 %v838_v14 }
 0x4d2   :  { %v371_v18 = vpop.f32.mrf.mxu2  ;;  %800 = vmatmul.msk.f32.vlgmr.msra.gmra.mxu3 %vm171_vm2, %v673_v15 }
 0x4d3   :  { %784 = vmatmul.msk.f32.vlgmr.msra.gmra.mxu0 %vm139_vm1, %v371_v18 }
 0x4da   :  { %v374_v24 = vpop.f32.mrf.mxu2  ;;  %801 = vmatmul.msk.f32.gmra.mxu3 %vm171_vm2, %v674_v23 }
 0x4db   :  { %785 = vmatmul.msk.f32.gmra.mxu0 %vm139_vm1, %v374_v24 }
 0x4e2   :  { %v551_v61 = vpop.f32.mrf.mxu2 }
 0x4e3   :  { %794 = vmatmul.msk.f32.vlgmr.msrb.gmra.mxu0 %vm139_vm1, %v551_v61 }
 0x4ea   :  { %v554_v25 = vpop.f32.mrf.mxu2 }
 0x4eb   :  { %795 = vmatmul.msk.f32.gmra.mxu0 %vm139_vm1, %v554_v25 }
 0x550   :  { %v400_v5 = vpop.f32.mrf.mxu0 }
 0x551   :  { %v430_v34 = vadd.f32 %v1146_v28, %v400_v5 }
 0x555   :  { %v704_v27 = vpop.f32.mrf.mxu3 }
 0x556   :  { %802 = vmatmul.msk.f32.vlgmr.msrb.gmra.mxu2 %vm139_vm1, %v704_v27 }
 0x558   :  { %v403_v32 = vpop.f32.mrf.mxu0 }
 0x559   :  { %v433_v40 = vadd.f32 %v1152_v31, %v403_v32 }
 0x55d   :  { %v707_v30 = vpop.f32.mrf.mxu3 }
 0x55e   :  { %803 = vmatmul.msk.f32.gmra.mxu2 %vm139_vm1, %v707_v30 }
 0x560   :  { %v580_v33 = vpop.f32.mrf.mxu0 }
 0x561   :  { %v586_v35 = vadd.f32 %v580_v33, %v430_v34 }
 0x568   :  { %v583_v29 = vpop.f32.mrf.mxu0 }
 0x569   :  { %v587_v41 = vadd.f32 %v583_v29, %v433_v40 }
 0x5d9   :  { %v733_v37 = vpop.f32.mrf.mxu2 }
 0x5da   :  { %v739_v38 = vadd.f32 %v733_v37, %v586_v35 }
 0x5dc   :  { %v745_v39 = vadd.f32 %v845_v36, %v739_v38 }
 0x5de   :  { %747 = vst.msk [vmem:[#allocation10] sm:$0xff] %vm103_vm0, %v745_v39 }
 0x5e1   :  { %v736_v43 = vpop.f32.mrf.mxu2 }
 0x5e2   :  { %v740_v28 = vadd.f32 %v736_v43, %v587_v41 }
 0x5e4   :  { %v746_v44 = vadd.f32 %v845_v36, %v740_v28 }
 0x5e6   :  { %748 = vst.msk [vmem:[#allocation10 + $0x8] sm:$0xff] %vm103_vm0, %v746_v44 }
 0x5e7   :  { %761 = dma.vmem_to_hbm [thread:$0]  %s754_s8, 256, %s756_s1, [#allocation4], %s1007_s29, %s1007_s29, %s1008_s30  }
 0x5e8   :  { %1004 = dma.done.wait [#allocation4], 256  }
 0x5e9   :  { %1005 = vsyncadd [#allocation4], 4294967040 }
 0x5ea   :  { %766 = vsyncpa [#allocation3], 1 }
 0x5eb   :  { %767 = vsyncpa [#allocation6], 1 }
 0x5ec   :  { %768 = vsyncpa [#allocation9], 1 }
 0x5ed   :  { %769 = vsyncpa [#allocation4], 1 }

</bundles_post_ra>
